<compile_context>
chip_gen: v7x
topology: tpu7x:2x2x1
jax: 0.10.0
libtpu: 0.0.40
codegen_flags: <defaults>
</compile_context>

<pallas_src>
import functools

import jax
import jax.numpy as jnp
from jax.experimental import pallas as pl
from jax.experimental.pallas import tpu as pltpu

LANE = 128      # hidden/output feature dims padded to this lane width
SUBLANE = 8     # batch-tile granularity
MAX_TB = 1024   # cap on batch rows per grid step


def _round_up(n, m):
    return ((n + m - 1) // m) * m


def _choose_tb(batch):
    """Batch-adaptive tile: whole batch for small B (no dead rows), at least
    two tiles for large B (v7x megacore), capped at MAX_TB rows."""
    b8 = _round_up(max(batch, 1), SUBLANE)
    if b8 <= 512:
        return b8
    return min(_round_up((b8 + 1) // 2, SUBLANE), MAX_TB)


def dqn_mlp_kernel(x_ref, w1_ref, b1_ref, w2_ref, b2_ref, w3_ref, b3_ref, o_ref):
    # One batch tile per grid step; weights/biases use constant index_maps so
    # they are DMA'd once and stay VMEM-resident across the whole batch sweep.
    op_dt = w1_ref.dtype  # MXU operand dtype (bf16 default, f32 optional)

    x = x_ref[...]
    h1 = jnp.dot(x, w1_ref[...], preferred_element_type=jnp.float32) + b1_ref[...]
    h1 = jnp.maximum(h1, 0.0)            # bias-add / ReLU stay f32 (v5e VPU has no bf16)

    h2 = jnp.dot(h1.astype(op_dt), w2_ref[...],
                 preferred_element_type=jnp.float32) + b2_ref[...]
    h2 = jnp.maximum(h2, 0.0)

    out = jnp.dot(h2.astype(op_dt), w3_ref[...],
                  preferred_element_type=jnp.float32) + b3_ref[...]
    o_ref[...] = out.astype(o_ref.dtype)


def prepare_params(params, compute_dtype=jnp.bfloat16):
    """One-time (outside the hot path) padding of feature dims to 128 lanes and
    cast of the matmul operands to `compute_dtype`; biases stay f32.
    w1's contraction dim keeps the true input width (no 8x input padding)."""
    d_in, h = params["w1"].shape
    d_out = params["w3"].shape[1]
    h_p = _round_up(h, LANE)
    d_out_p = _round_up(d_out, LANE)

    def pad(a, rows, cols):
        return jnp.pad(a, ((0, rows - a.shape[0]), (0, cols - a.shape[1])))

    return {
        "w1": pad(params["w1"], d_in, h_p).astype(compute_dtype),
        "b1": pad(params["b1"], 1, h_p).astype(jnp.float32),
        "w2": pad(params["w2"], h_p, h_p).astype(compute_dtype),
        "b2": pad(params["b2"], 1, h_p).astype(jnp.float32),
        "w3": pad(params["w3"], h_p, d_out_p).astype(compute_dtype),
        "b3": pad(params["b3"], 1, d_out_p).astype(jnp.float32),
    }


@functools.partial(jax.jit, static_argnames=("out_dim",))
def dqn_forward(state, pp, out_dim):
    """state: (B, input_dim) f32; pp: prepare_params(...) output; out_dim: #actions."""
    B, d_in = state.shape
    assert pp["w1"].shape[0] == d_in
    h_p = pp["w1"].shape[1]
    d_out_p = pp["w3"].shape[1]
    op_dt = pp["w1"].dtype

    TB = _choose_tb(B)
    B_p = _round_up(B, TB)
    n_tiles = B_p // TB

    # Only batch rows are padded; the input lane dim stays d_in (block last dim
    # equals the full array dim), so the x stream is not inflated 8x in HBM.
    x = jnp.pad(state, ((0, B_p - B), (0, 0))).astype(op_dt)

    itemsize = jnp.dtype(op_dt).itemsize
    flops = 2 * B_p * (d_in * h_p + h_p * h_p + h_p * d_out_p)
    bytes_accessed = (
        x.size * itemsize
        + (pp["w1"].size + pp["w2"].size + pp["w3"].size) * itemsize
        + (pp["b1"].size + pp["b2"].size + pp["b3"].size) * 4
        + B_p * d_out_p * 4)

    # VMEM footprint is << 1 MiB at these sizes; if hidden_dim/TB ever grow
    # large, set vmem_limit_bytes and single-buffer the resident weight specs.
    out_p = pl.pallas_call(
        dqn_mlp_kernel,
        out_shape=jax.ShapeDtypeStruct((B_p, d_out_p), jnp.float32),
        grid=(n_tiles,),
        in_specs=[
            pl.BlockSpec((TB, d_in), lambda i: (i, 0)),       # batch tile, true lane width
            pl.BlockSpec((d_in, h_p), lambda i: (0, 0)),      # w1, VMEM-resident
            pl.BlockSpec((1, h_p), lambda i: (0, 0)),         # b1
            pl.BlockSpec((h_p, h_p), lambda i: (0, 0)),       # w2
            pl.BlockSpec((1, h_p), lambda i: (0, 0)),         # b2
            pl.BlockSpec((h_p, d_out_p), lambda i: (0, 0)),   # w3
            pl.BlockSpec((1, d_out_p), lambda i: (0, 0)),     # b3
        ],
        # Lane-dense 128-wide output block -> unmasked vst; real cols sliced below.
        out_specs=pl.BlockSpec((TB, d_out_p), lambda i: (i, 0)),
        compiler_params=pltpu.CompilerParams(
            dimension_semantics=("parallel",),   # shard batch tiles across TCs (v7x)
        ),
        cost_estimate=pl.CostEstimate(
            flops=flops, transcendentals=0, bytes_accessed=bytes_accessed),
    )(x, pp["w1"], pp["b1"], pp["w2"], pp["b2"], pp["w3"], pp["b3"])

    return out_p[:B, :out_dim]


def init_params(key, input_dim, hidden_dim, output_dim):
    """Deterministic init matching PyTorch Linear (weights stored transposed: (in, out))."""
    ks = jax.random.split(key, 6)

    def linear(kw, kb, fan_in, fan_out):
        bound = 1.0 / jnp.sqrt(fan_in)
        w = jax.random.uniform(kw, (fan_in, fan_out), jnp.float32, -bound, bound)
        b = jax.random.uniform(kb, (1, fan_out), jnp.float32, -bound, bound)
        return w, b

    w1, b1 = linear(ks[0], ks[1], input_dim, hidden_dim)
    w2, b2 = linear(ks[2], ks[3], hidden_dim, hidden_dim)
    w3, b3 = linear(ks[4], ks[5], hidden_dim, output_dim)
    return {"w1": w1, "b1": b1, "w2": w2, "b2": b2, "w3": w3, "b3": b3}


def dqn_forward_ref(state, p):
    hp = jax.lax.Precision.HIGHEST
    h1 = jnp.maximum(jnp.dot(state, p["w1"], precision=hp) + p["b1"], 0.0)
    h2 = jnp.maximum(jnp.dot(h1, p["w2"], precision=hp) + p["b2"], 0.0)
    return jnp.dot(h2, p["w3"], precision=hp) + p["b3"]


# TODO(synk): Adam optimizer / MSELoss / training step from DQNModel.__init__ are
# out of scope for the forward-pass kernel and are not implemented here.

if __name__ == "__main__":
    input_dim, hidden_dim, output_dim = 16, 32, 4

    key = jax.random.PRNGKey(0)
    kx, kp = jax.random.split(key)
    params = init_params(kp, input_dim, hidden_dim, output_dim)

    pp_bf16 = prepare_params(params, jnp.bfloat16)  # fast path (all generations)
    pp_f32 = prepare_params(params, jnp.float32)    # bit-safe path

    # Training-sized batch: 256 rows -> a single 256-row tile.
    state = jax.random.normal(kx, (256, input_dim), jnp.float32)
    ref = dqn_forward_ref(state, params)

    out_bf16 = jax.block_until_ready(dqn_forward(state, pp_bf16, out_dim=output_dim))
    assert out_bf16.shape == (256, output_dim)
    assert jnp.allclose(out_bf16, ref, atol=5e-2, rtol=5e-2), "bf16 path mismatch"

    out_f32 = jax.block_until_ready(dqn_forward(state, pp_f32, out_dim=output_dim))
    assert out_f32.shape == (256, output_dim)
    assert jnp.allclose(out_f32, ref, atol=2e-3, rtol=2e-3), "f32 path mismatch"

    # Tiny action-selection batch (B=7 -> 8-row tile, no 128-row dead padding).
    small = state[:7]
    out_small = jax.block_until_ready(dqn_forward(small, pp_bf16, out_dim=output_dim))
    assert out_small.shape == (7, output_dim)
    assert jnp.allclose(out_small, dqn_forward_ref(small, params),
                        atol=5e-2, rtol=5e-2), "small-batch mismatch"

    # Large batch -> two tiles (exercises the grid / megacore path).
    big = jax.random.normal(jax.random.PRNGKey(1), (600, input_dim), jnp.float32)
    out_big = jax.block_until_ready(dqn_forward(big, pp_bf16, out_dim=output_dim))
    assert out_big.shape == (600, output_dim)
    assert jnp.allclose(out_big, dqn_forward_ref(big, params),
                        atol=5e-2, rtol=5e-2), "multi-tile mismatch"

    print("KERNEL_OK")
</pallas_src>

<mosaic_0001>
module attributes {stable_mosaic.version = 11 : i64} {
  func.func @dqn_mlp_kernel(%arg0: i32, %arg1: memref<256x16xbf16, #tpu.memory_space<vmem>>, %arg2: memref<16x128xbf16, #tpu.memory_space<vmem>>, %arg3: memref<1x128xf32, #tpu.memory_space<vmem>>, %arg4: memref<128x128xbf16, #tpu.memory_space<vmem>>, %arg5: memref<1x128xf32, #tpu.memory_space<vmem>>, %arg6: memref<128x128xbf16, #tpu.memory_space<vmem>>, %arg7: memref<1x128xf32, #tpu.memory_space<vmem>>, %arg8: memref<256x128xf32, #tpu.memory_space<vmem>>) attributes {dimension_semantics = [#tpu.dimension_semantics<parallel>], iteration_bounds = array<i64: 1>, scalar_prefetch = 0 : i64, scratch_operands = 0 : i64, tpu.core_type = #tpu.core_type<tc>, window_params = [{transform_indices = @transform_0, window_bounds = array<i64: 256, 16>}, {pipeline_mode = #tpu.pipeline_mode<synchronous>, transform_indices = @transform_1, window_bounds = array<i64: 16, 128>}, {pipeline_mode = #tpu.pipeline_mode<synchronous>, transform_indices = @transform_2, window_bounds = array<i64: 1, 128>}, {pipeline_mode = #tpu.pipeline_mode<synchronous>, transform_indices = @transform_3, window_bounds = array<i64: 128, 128>}, {pipeline_mode = #tpu.pipeline_mode<synchronous>, transform_indices = @transform_4, window_bounds = array<i64: 1, 128>}, {pipeline_mode = #tpu.pipeline_mode<synchronous>, transform_indices = @transform_5, window_bounds = array<i64: 128, 128>}, {pipeline_mode = #tpu.pipeline_mode<synchronous>, transform_indices = @transform_6, window_bounds = array<i64: 1, 128>}, {transform_indices = @transform_7, window_bounds = array<i64: 256, 128>}]} {
    %c0 = arith.constant 0 : index
    %c0_0 = arith.constant 0 : index
    %0 = vector.load %arg1[%c0, %c0_0] : memref<256x16xbf16, #tpu.memory_space<vmem>>, vector<256x16xbf16>
    %c0_1 = arith.constant 0 : index
    %c0_2 = arith.constant 0 : index
    %1 = vector.load %arg2[%c0_1, %c0_2] : memref<16x128xbf16, #tpu.memory_space<vmem>>, vector<16x128xbf16>
    %cst = arith.constant dense<0.000000e+00> : vector<256x128xf32>
    %2 = tpu.matmul %0, %1, %cst {dimension_numbers = #tpu.dot_dimension_numbers<[1], [0], [0], [1], [0, 0, 1, 1], [], []>} : vector<256x16xbf16>, vector<16x128xbf16>, vector<256x128xf32> -> vector<256x128xf32>
    %c0_3 = arith.constant 0 : index
    %c0_4 = arith.constant 0 : index
    %3 = vector.load %arg3[%c0_3, %c0_4] : memref<1x128xf32, #tpu.memory_space<vmem>>, vector<1x128xf32>
    %4 = vector.broadcast %3 : vector<1x128xf32> to vector<256x128xf32>
    %5 = arith.addf %2, %4 : vector<256x128xf32>
    %cst_5 = arith.constant 0.000000e+00 : f32
    %6 = vector.broadcast %cst_5 : f32 to vector<256x128xf32>
    %7 = arith.maximumf %5, %6 : vector<256x128xf32>
    %8 = arith.truncf %7 : vector<256x128xf32> to vector<256x128xbf16>
    %c0_6 = arith.constant 0 : index
    %c0_7 = arith.constant 0 : index
    %9 = vector.load %arg4[%c0_6, %c0_7] : memref<128x128xbf16, #tpu.memory_space<vmem>>, vector<128x128xbf16>
    %cst_8 = arith.constant dense<0.000000e+00> : vector<256x128xf32>
    %10 = tpu.matmul %8, %9, %cst_8 {dimension_numbers = #tpu.dot_dimension_numbers<[1], [0], [0], [1], [0, 0, 1, 1], [], []>} : vector<256x128xbf16>, vector<128x128xbf16>, vector<256x128xf32> -> vector<256x128xf32>
    %c0_9 = arith.constant 0 : index
    %c0_10 = arith.constant 0 : index
    %11 = vector.load %arg5[%c0_9, %c0_10] : memref<1x128xf32, #tpu.memory_space<vmem>>, vector<1x128xf32>
    %12 = vector.broadcast %11 : vector<1x128xf32> to vector<256x128xf32>
    %13 = arith.addf %10, %12 : vector<256x128xf32>
    %cst_11 = arith.constant 0.000000e+00 : f32
    %14 = vector.broadcast %cst_11 : f32 to vector<256x128xf32>
    %15 = arith.maximumf %13, %14 : vector<256x128xf32>
    %16 = arith.truncf %15 : vector<256x128xf32> to vector<256x128xbf16>
    %c0_12 = arith.constant 0 : index
    %c0_13 = arith.constant 0 : index
    %17 = vector.load %arg6[%c0_12, %c0_13] : memref<128x128xbf16, #tpu.memory_space<vmem>>, vector<128x128xbf16>
    %cst_14 = arith.constant dense<0.000000e+00> : vector<256x128xf32>
    %18 = tpu.matmul %16, %17, %cst_14 {dimension_numbers = #tpu.dot_dimension_numbers<[1], [0], [0], [1], [0, 0, 1, 1], [], []>} : vector<256x128xbf16>, vector<128x128xbf16>, vector<256x128xf32> -> vector<256x128xf32>
    %c0_15 = arith.constant 0 : index
    %c0_16 = arith.constant 0 : index
    %19 = vector.load %arg7[%c0_15, %c0_16] : memref<1x128xf32, #tpu.memory_space<vmem>>, vector<1x128xf32>
    %20 = vector.broadcast %19 : vector<1x128xf32> to vector<256x128xf32>
    %21 = arith.addf %18, %20 : vector<256x128xf32>
    %c0_17 = arith.constant 0 : index
    %c0_18 = arith.constant 0 : index
    %22 = vector.load %arg8[%c0_17, %c0_18] : memref<256x128xf32, #tpu.memory_space<vmem>>, vector<256x128xf32>
    tpu.vector_store %arg8[%c0_17, %c0_18], %21 {strides = array<i32>} : memref<256x128xf32, #tpu.memory_space<vmem>>, vector<256x128xf32>,
    return
  }
  func.func @transform_0(%arg0: i32) -> (i32, i32) {
    %c0_i32 = arith.constant 0 : i32
    %c0_i32_0 = arith.constant 0 : i32
    return %arg0, %c0_i32 : i32, i32
  }
  func.func @transform_1(%arg0: i32) -> (i32, i32) {
    %c0_i32 = arith.constant 0 : i32
    %c0_i32_0 = arith.constant 0 : i32
    %c0_i32_1 = arith.constant 0 : i32
    return %c0_i32, %c0_i32_0 : i32, i32
  }
  func.func @transform_2(%arg0: i32) -> (i32, i32) {
    %c0_i32 = arith.constant 0 : i32
    %c0_i32_0 = arith.constant 0 : i32
    %c0_i32_1 = arith.constant 0 : i32
    return %c0_i32, %c0_i32_0 : i32, i32
  }
  func.func @transform_3(%arg0: i32) -> (i32, i32) {
    %c0_i32 = arith.constant 0 : i32
    %c0_i32_0 = arith.constant 0 : i32
    %c0_i32_1 = arith.constant 0 : i32
    return %c0_i32, %c0_i32_0 : i32, i32
  }
  func.func @transform_4(%arg0: i32) -> (i32, i32) {
    %c0_i32 = arith.constant 0 : i32
    %c0_i32_0 = arith.constant 0 : i32
    %c0_i32_1 = arith.constant 0 : i32
    return %c0_i32, %c0_i32_0 : i32, i32
  }
  func.func @transform_5(%arg0: i32) -> (i32, i32) {
    %c0_i32 = arith.constant 0 : i32
    %c0_i32_0 = arith.constant 0 : i32
    %c0_i32_1 = arith.constant 0 : i32
    return %c0_i32, %c0_i32_0 : i32, i32
  }
  func.func @transform_6(%arg0: i32) -> (i32, i32) {
    %c0_i32 = arith.constant 0 : i32
    %c0_i32_0 = arith.constant 0 : i32
    %c0_i32_1 = arith.constant 0 : i32
    return %c0_i32, %c0_i32_0 : i32, i32
  }
  func.func @transform_7(%arg0: i32) -> (i32, i32) {
    %c0_i32 = arith.constant 0 : i32
    %c0_i32_0 = arith.constant 0 : i32
    return %arg0, %c0_i32 : i32, i32
  }
}

</mosaic_0001>

<bundles_post_ra>
// kernel: dqn_forward.1
= control target key start
LH: loop header
LB: loop body
LE: loop exit
PB: predicated region body
PF: predicated region fallthrough
CT: control target
= control target key end

     0   :  { %vm154_vm0 = vcmask 130048   ;;  %s1610_s1 = inlined_call_operand.vmem [shape: bf16[16,128], index: 1, kind: input, shape index: {}]   ;;  %s1611_s0 = inlined_call_operand.vmem [shape: bf16[256,16], index: 0, kind: input, shape index: {}]   ;;  %s1612_s3 = inlined_call_operand.vmem [shape: bf16[128,128], index: 3, kind: input, shape index: {}]   ;;  %s1613_s5 = inlined_call_operand.vmem [shape: bf16[128,128], index: 5, kind: input, shape index: {}]   ;;  %s1614_s2 = inlined_call_operand.vmem [shape: f32[1,128], index: 2, kind: input, shape index: {}]   ;;  %s1615_s4 = inlined_call_operand.vmem [shape: f32[1,128], index: 4, kind: input, shape index: {}]   ;;  %s1616_s6 = inlined_call_operand.vmem [shape: f32[1,128], index: 6, kind: input, shape index: {}]   ;;  %s1617_s7 = inlined_call_operand.vmem [shape: f32[256,128], index: 7, kind: output, shape index: {}]  }
   0x1   :  { %v1209_v0 = vld [vmem:[%s1610_s1] sm:$0xff]   ;;  %v1211_v2 = vld [vmem:[%s1611_s0 + $0x8] sm:$0xff]   ;;  %v1212_v3 = vld [vmem:[%s1611_s0 + $0x10] sm:$0xff]  }
   0x2   :  { %v1210_v1 = vld [vmem:[%s1611_s0] sm:$0xff]   ;;  %1077 = vmatprep.subr.bf16.mxu0 %v1209_v0  ;;  %1207 = vmatprep.subr.bf16.mxu1 %v1209_v0  ;;  %v1213_v4 = vld [vmem:[%s1611_s0 + $0x18] sm:$0xff]   ;;  %v1219_v7 = vld [vmem:[%s1611_s0 + $0x48] sm:$0xff]  }
   0x3   :  { %1078 = vmatpush3.bf16.msra.mxu0 %v1209_v0  ;;  %1079 = vmatprep.mubr.msk.bf16.mxu0 %vm154_vm0, %v1210_v1  ;;  %v1214_v5 = vld [vmem:[%s1611_s0 + $0x20] sm:$0xff]   ;;  %v1220_v8 = vld [vmem:[%s1611_s0 + $0x50] sm:$0xff]   ;;  %v1221_v9 = vld [vmem:[%s1611_s0 + $0x58] sm:$0xff]  }
   0x4   :  { %1208 = vmatpush3.bf16.msra.mxu1 %v1209_v0  ;;  %v1218_v6 = vld [vmem:[%s1611_s0 + $0x40] sm:$0xff]   ;;  %v1215_v10 = vld [vmem:[%s1611_s0 + $0x28] sm:$0xff]   ;;  %v1216_v14 = vld [vmem:[%s1611_s0 + $0x30] sm:$0xff]  }
   0x5   :  { %1095 = vmatprep.mubr.msk.bf16.mxu1 %vm154_vm0, %v1218_v6  ;;  %v1222_v11 = vld [vmem:[%s1611_s0 + $0x60] sm:$0xff]   ;;  %v1227_v13 = vld [vmem:[%s1612_s3 + $0x8] sm:$0xff]   ;;  %v1228_v15 = vld [vmem:[%s1612_s3 + $0x10] sm:$0xff]  }
   0x6   :  { %1080 = vmatmul.mubr.msk.bf16.vlgmr.msra.gmra.mrb[0].mxu0 %vm154_vm0, %v1211_v2  ;;  %v1226_v12 = vld [vmem:[%s1612_s3] sm:$0xff]   ;;  %v1223_v16 = vld [vmem:[%s1611_s0 + $0x68] sm:$0xff]   ;;  %v1224_v17 = vld [vmem:[%s1611_s0 + $0x70] sm:$0xff]  }
   0x7   :  { %1083 = vmatprep.mubr.msk.bf16.mxu0 %vm154_vm0, %v1212_v3  ;;  %1096 = vmatmul.mubr.msk.bf16.vlgmr.msra.gmra.mrb[0].mxu1 %vm154_vm0, %v1219_v7  ;;  %v1217_v18 = vld [vmem:[%s1611_s0 + $0x38] sm:$0xff]   ;;  %v1230_v20 = vld [vmem:[%s1612_s3 + $0x20] sm:$0xff]   ;;  %v1231_v22 = vld [vmem:[%s1612_s3 + $0x28] sm:$0xff]  }
   0x8   :  { %1099 = vmatprep.mubr.msk.bf16.mxu1 %vm154_vm0, %v1220_v8  ;;  %1111 = vmatprep.subr.bf16.mxu1 %v1226_v12  ;;  %v1229_v19 = vld [vmem:[%s1612_s3 + $0x18] sm:$0xff]   ;;  %v1232_v23 = vld [vmem:[%s1612_s3 + $0x30] sm:$0xff]   ;;  %v1234_v25 = vld [vmem:[%s1613_s5] sm:$0xff]  }
   0x9   :  { %1112 = vmatpush3.bf16.msra.mxu1 %v1226_v12  ;;  %v1225_v21 = vld [vmem:[%s1611_s0 + $0x78] sm:$0xff]   ;;  %v1235_v26 = vld [vmem:[%s1613_s5 + $0x8] sm:$0xff]   ;;  %1159 = vmatprep.subr.bf16.mxu0 %v1234_v25  ;;  %v1236_v27 = vld [vmem:[%s1613_s5 + $0x10] sm:$0xff]  }
   0xa   :  { %1113 = vmatprep.subr.bf16.mxu1 %v1227_v13  ;;  %v1233_v24 = vld [vmem:[%s1612_s3 + $0x38] sm:$0xff]   ;;  %1160 = vmatpush3.bf16.msra.mxu0 %v1234_v25  ;;  %v1238_v29 = vld [vmem:[%s1613_s5 + $0x20] sm:$0xff]   ;;  %v1239_v30 = vld [vmem:[%s1613_s5 + $0x28] sm:$0xff]  }
   0xb   :  { %1161 = vmatprep.subr.bf16.mxu0 %v1235_v26  ;;  %v1237_v28 = vld [vmem:[%s1613_s5 + $0x18] sm:$0xff]   ;;  %v1394_v31 = vld [vmem:[%s1614_s2] ss:$0 sm:$0xff] }
   0xd   :  { %1114 = vmatpush3.bf16.msra.mxu1 %v1227_v13 }
   0xe   :  { %1084 = vmatmul.mubr.msk.bf16.gmra.mrb[4].mxu0 %vm154_vm0, %v1213_v4  ;;  %1115 = vmatprep.subr.bf16.mxu1 %v1228_v15 }
   0xf   :  { %1087 = vmatprep.mubr.msk.bf16.mxu0 %vm154_vm0, %v1214_v5  ;;  %1100 = vmatmul.mubr.msk.bf16.gmra.mrb[4].mxu1 %vm154_vm0, %v1221_v9 }
  0x10   :  { %1103 = vmatprep.mubr.msk.bf16.mxu1 %vm154_vm0, %v1222_v11  ;;  %1162 = vmatpush3.bf16.msra.mxu0 %v1235_v26 }
  0x11   :  { %1116 = vmatpush3.bf16.msra.mxu1 %v1228_v15  ;;  %1163 = vmatprep.subr.bf16.mxu0 %v1236_v27 }
  0x12   :  { %1117 = vmatprep.subr.bf16.mxu1 %v1229_v19 }
  0x14   :  { %1164 = vmatpush3.bf16.msra.mxu0 %v1236_v27 }
  0x15   :  { %1118 = vmatpush3.bf16.msra.mxu1 %v1229_v19  ;;  %1165 = vmatprep.subr.bf16.mxu0 %v1237_v28 }
  0x16   :  { %1088 = vmatmul.mubr.msk.bf16.gmra.mrb[8].mxu0 %vm154_vm0, %v1215_v10  ;;  %1119 = vmatprep.subr.bf16.mxu1 %v1230_v20 }
  0x17   :  { %1091 = vmatprep.mubr.msk.bf16.mxu0 %vm154_vm0, %v1216_v14  ;;  %1104 = vmatmul.mubr.msk.bf16.gmra.mrb[8].mxu1 %vm154_vm0, %v1223_v16 }
  0x18   :  { %1107 = vmatprep.mubr.msk.bf16.mxu1 %vm154_vm0, %v1224_v17  ;;  %1166 = vmatpush3.bf16.msra.mxu0 %v1237_v28 }
  0x19   :  { %1120 = vmatpush3.bf16.msra.mxu1 %v1230_v20  ;;  %1167 = vmatprep.subr.bf16.mxu0 %v1238_v29 }
  0x1a   :  { %1121 = vmatprep.subr.bf16.mxu1 %v1231_v22 }
  0x1c   :  { %1168 = vmatpush3.bf16.msra.mxu0 %v1238_v29 }
  0x1d   :  { %1122 = vmatpush3.bf16.msra.mxu1 %v1231_v22  ;;  %1169 = vmatprep.subr.bf16.mxu0 %v1239_v30 }
  0x1e   :  { %1092 = vmatmul.mubr.msk.bf16.gmra.mrb[12].mxu0 %vm154_vm0, %v1217_v18  ;;  %1123 = vmatprep.subr.bf16.mxu1 %v1232_v23 }
  0x1f   :  { %1108 = vmatmul.mubr.msk.bf16.gmra.mrb[12].mxu1 %vm154_vm0, %v1225_v21 }
  0x20   :  { %1170 = vmatpush3.bf16.msra.mxu0 %v1239_v30 }
  0x21   :  { %1124 = vmatpush3.bf16.msra.mxu1 %v1232_v23 }
  0x22   :  { %1125 = vmatprep.subr.bf16.mxu1 %v1233_v24 }
  0x25   :  { %1126 = vmatpush3.bf16.msra.mxu1 %v1233_v24 }
  0xd9   :  { %v1081_v32 = vpop.f32.mrb[0].mxu0 }
  0xda   :  { %v246_v33 = vadd.f32 %v1081_v32, %v1394_v31  ;;  %v237_v34 = vpop.f32.mrb[1].mxu0  ;;  %v1097_v44 = vpop.f32.mrb[0].mxu1 }
  0xdb   :  { %v238_v35 = vadd.f32 %v1394_v31, %v237_v34  ;;  %v1082_v36 = vpop.f32.mrb[2].mxu0  ;;  %v310_v46 = vadd.f32 %v1097_v44, %v1394_v31  ;;  %v301_v47 = vpop.f32.mrb[1].mxu1 }
  0xdc   :  { %v249_v37 = vadd.f32 %v1082_v36, %v1394_v31  ;;  %v240_v38 = vpop.f32.mrb[3].mxu0  ;;  %v366_v40 = vmax.f32 %v246_v33, 0.0  ;;  %v302_v50 = vadd.f32 %v1394_v31, %v301_v47  ;;  %v1098_v51 = vpop.f32.mrb[2].mxu1 }
  0xdd   :  { %v241_v39 = vadd.f32 %v1394_v31, %v240_v38  ;;  %v364_v42 = vmax.f32 %v238_v35, 0.0  ;;  %v382_v54 = vmax.f32 %v310_v46, 0.0  ;;  %v313_v55 = vadd.f32 %v1098_v51, %v1394_v31  ;;  %v304_v56 = vpop.f32.mrb[3].mxu1 }
  0xde   :  { %v367_v41 = vmax.f32 %v249_v37, 0.0  ;;  %v380_v59 = vmax.f32 %v302_v50, 0.0  ;;  %v305_v60 = vadd.f32 %v1394_v31, %v304_v56 }
  0xdf   :  { %v365_v43 = vmax.f32 %v241_v39, 0.0  ;;  %v383_v63 = vmax.f32 %v313_v55, 0.0 }
  0xe0   :  { %v397_v45 = vpack.c.bf16 %v367_v41, %v366_v40  ;;  %v381_v1 = vmax.f32 %v305_v60, 0.0 }
  0xe1   :  { %v396_v48 = vpack.c.bf16 %v365_v43, %v364_v42  ;;  %v1085_v49 = vpop.f32.mrb[4].mxu0  ;;  %v1408_v4 = vpack.c.bf16 %v383_v63, %v382_v54 }
  0xe2   :  { %v262_v52 = vadd.f32 %v1085_v49, %v1394_v31  ;;  %v253_v53 = vpop.f32.mrb[5].mxu0  ;;  %v1410_v7 = vpack.c.bf16 %v381_v1, %v380_v59  ;;  %v1101_v8 = vpop.f32.mrb[4].mxu1 }
  0xe3   :  { %v254_v57 = vadd.f32 %v1394_v31, %v253_v53  ;;  %v1086_v58 = vpop.f32.mrb[6].mxu0  ;;  %1127 = vmatprep.mubr.bf16.mxu1 %v396_v48  ;;  %v326_v10 = vadd.f32 %v1101_v8, %v1394_v31  ;;  %v317_v11 = vpop.f32.mrb[5].mxu1 }
  0xe4   :  { %v265_v61 = vadd.f32 %v1086_v58, %v1394_v31  ;;  %v256_v62 = vpop.f32.mrb[7].mxu0  ;;  %1128 = vmatmul.mubr.bf16.vlgmr.msra.gmra.mrb[16].mxu1 %v397_v45  ;;  %v370_v2 = vmax.f32 %v262_v52, 0.0  ;;  %v318_v14 = vadd.f32 %v1394_v31, %v317_v11  ;;  %v1102_v15 = vpop.f32.mrb[6].mxu1 }
  0xe5   :  { %v257_v0 = vadd.f32 %v1394_v31, %v256_v62  ;;  %v368_v5 = vmax.f32 %v254_v57, 0.0  ;;  %v386_v18 = vmax.f32 %v326_v10, 0.0  ;;  %v329_v19 = vadd.f32 %v1102_v15, %v1394_v31  ;;  %v320_v20 = vpop.f32.mrb[7].mxu1 }
  0xe6   :  { %v371_v3 = vmax.f32 %v265_v61, 0.0  ;;  %v384_v23 = vmax.f32 %v318_v14, 0.0  ;;  %v321_v24 = vadd.f32 %v1394_v31, %v320_v20 }
  0xe7   :  { %v369_v6 = vmax.f32 %v257_v0, 0.0  ;;  %v387_v27 = vmax.f32 %v329_v19, 0.0  ;;  %v1240_v19 = vld [vmem:[%s1613_s5 + $0x30] sm:$0xff]  }
  0xe8   :  { %v399_v9 = vpack.c.bf16 %v371_v3, %v370_v2  ;;  %v385_v29 = vmax.f32 %v321_v24, 0.0  ;;  %1171 = vmatprep.subr.bf16.mxu0 %v1240_v19 }
  0xe9   :  { %v398_v12 = vpack.c.bf16 %v369_v6, %v368_v5  ;;  %v1089_v13 = vpop.f32.mrb[8].mxu0  ;;  %v407_v33 = vpack.c.bf16 %v387_v27, %v386_v18  ;;  %1172 = vmatpush3.bf16.msra.mxu0 %v1240_v19 }
  0xea   :  { %v278_v16 = vadd.f32 %v1089_v13, %v1394_v31  ;;  %v269_v17 = vpop.f32.mrb[9].mxu0  ;;  %v406_v36 = vpack.c.bf16 %v385_v29, %v384_v23  ;;  %v1105_v37 = vpop.f32.mrb[8].mxu1 }
  0xeb   :  { %v270_v21 = vadd.f32 %v1394_v31, %v269_v17  ;;  %v1090_v22 = vpop.f32.mrb[10].mxu0  ;;  %1131 = vmatprep.mubr.bf16.mxu1 %v398_v12  ;;  %v342_v39 = vadd.f32 %v1105_v37, %v1394_v31  ;;  %v333_v40 = vpop.f32.mrb[9].mxu1 }
  0xec   :  { %v281_v25 = vadd.f32 %v1090_v22, %v1394_v31  ;;  %v272_v26 = vpop.f32.mrb[11].mxu0  ;;  %1132 = vmatmul.mubr.bf16.gmra.mrb[20].mxu1 %v399_v9  ;;  %v374_v30 = vmax.f32 %v278_v16, 0.0  ;;  %v334_v43 = vadd.f32 %v1394_v31, %v333_v40  ;;  %v1106_v44 = vpop.f32.mrb[10].mxu1 }
  0xed   :  { %v273_v28 = vadd.f32 %v1394_v31, %v272_v26  ;;  %v372_v34 = vmax.f32 %v270_v21, 0.0  ;;  %v390_v47 = vmax.f32 %v342_v39, 0.0  ;;  %v345_v48 = vadd.f32 %v1106_v44, %v1394_v31  ;;  %v336_v49 = vpop.f32.mrb[11].mxu1 }
  0xee   :  { %v375_v32 = vmax.f32 %v281_v25, 0.0  ;;  %v388_v52 = vmax.f32 %v334_v43, 0.0  ;;  %v337_v53 = vadd.f32 %v1394_v31, %v336_v49 }
  0xef   :  { %v373_v35 = vmax.f32 %v273_v28, 0.0  ;;  %v391_v56 = vmax.f32 %v345_v48, 0.0 }
  0xf0   :  { %v401_v38 = vpack.c.bf16 %v375_v32, %v374_v30  ;;  %v389_v58 = vmax.f32 %v337_v53, 0.0 }
  0xf1   :  { %v400_v41 = vpack.c.bf16 %v373_v35, %v372_v34  ;;  %v1093_v42 = vpop.f32.mrb[12].mxu0  ;;  %v409_v61 = vpack.c.bf16 %v391_v56, %v390_v47 }
  0xf2   :  { %v294_v45 = vadd.f32 %v1093_v42, %v1394_v31  ;;  %v285_v46 = vpop.f32.mrb[13].mxu0  ;;  %v408_v0 = vpack.c.bf16 %v389_v58, %v388_v52  ;;  %v1109_v1 = vpop.f32.mrb[12].mxu1 }
  0xf3   :  { %v286_v50 = vadd.f32 %v1394_v31, %v285_v46  ;;  %v1094_v51 = vpop.f32.mrb[14].mxu0  ;;  %1135 = vmatprep.mubr.bf16.mxu1 %v400_v41  ;;  %v358_v3 = vadd.f32 %v1109_v1, %v1394_v31  ;;  %v349_v5 = vpop.f32.mrb[13].mxu1 }
  0xf4   :  { %v297_v54 = vadd.f32 %v1094_v51, %v1394_v31  ;;  %v288_v55 = vpop.f32.mrb[15].mxu0  ;;  %1136 = vmatmul.mubr.bf16.gmra.mrb[24].mxu1 %v401_v38  ;;  %v378_v59 = vmax.f32 %v294_v45, 0.0  ;;  %v350_v8 = vadd.f32 %v1394_v31, %v349_v5  ;;  %v1110_v9 = vpop.f32.mrb[14].mxu1 }
  0xf5   :  { %v289_v57 = vadd.f32 %v1394_v31, %v288_v55  ;;  %v376_v62 = vmax.f32 %v286_v50, 0.0  ;;  %v394_v10 = vmax.f32 %v358_v3, 0.0  ;;  %v361_v11 = vadd.f32 %v1110_v9, %v1394_v31  ;;  %v352_v12 = vpop.f32.mrb[15].mxu1 }
  0xf6   :  { %v379_v60 = vmax.f32 %v297_v54, 0.0  ;;  %v392_v13 = vmax.f32 %v350_v8, 0.0  ;;  %v353_v14 = vadd.f32 %v1394_v31, %v352_v12  ;;  %v1241_v31 = vld [vmem:[%s1613_s5 + $0x38] sm:$0xff]  }
  0xf7   :  { %v377_v63 = vmax.f32 %v289_v57, 0.0  ;;  %v395_v15 = vmax.f32 %v361_v11, 0.0  ;;  %1173 = vmatprep.subr.bf16.mxu0 %v1241_v31 }
  0xf8   :  { %v403_v2 = vpack.c.bf16 %v379_v60, %v378_v59  ;;  %v393_v16 = vmax.f32 %v353_v14, 0.0  ;;  %1174 = vmatpush3.bf16.msra.mxu0 %v1241_v31 }
  0xf9   :  { %v402_v6 = vpack.c.bf16 %v377_v63, %v376_v62  ;;  %v411_v17 = vpack.c.bf16 %v395_v15, %v394_v10 }
  0xfa   :  { %v410_v18 = vpack.c.bf16 %v393_v16, %v392_v13 }
  0xfb   :  { %1139 = vmatprep.mubr.bf16.mxu1 %v402_v6 }
  0xfc   :  { %1140 = vmatmul.mubr.bf16.gmra.mrb[28].mxu1 %v403_v2 }
  0xfd   :  { %1143 = vmatprep.mubr.bf16.mxu1 %v1410_v7 }
 0x104   :  { %1144 = vmatmul.mubr.bf16.gmra.mrb[32].mxu1 %v1408_v4  ;;  %v1443_v4 = vld [vmem:[%s1615_s4] ss:$0 sm:$0xff] }
 0x105   :  { %1147 = vmatprep.mubr.bf16.mxu1 %v406_v36 }
 0x10c   :  { %1148 = vmatmul.mubr.bf16.gmra.mrb[36].mxu1 %v407_v33 }
 0x10d   :  { %1151 = vmatprep.mubr.bf16.mxu1 %v408_v0 }
 0x114   :  { %1152 = vmatmul.mubr.bf16.gmra.mrb[40].mxu1 %v409_v61 }
 0x115   :  { %1155 = vmatprep.mubr.bf16.mxu1 %v410_v18 }
 0x11c   :  { %1156 = vmatmul.mubr.bf16.gmra.mrb[44].mxu1 %v411_v17 }
 0x1b7   :  { %v1129_v7 = vpop.f32.mrb[16].mxu1 }
 0x1b8   :  { %v526_v20 = vadd.f32 %v1129_v7, %v1443_v4  ;;  %v517_v21 = vpop.f32.mrb[17].mxu1 }
 0x1b9   :  { %v518_v22 = vadd.f32 %v1443_v4, %v517_v21  ;;  %v1130_v23 = vpop.f32.mrb[18].mxu1 }
 0x1ba   :  { %v529_v24 = vadd.f32 %v1130_v23, %v1443_v4  ;;  %v520_v25 = vpop.f32.mrb[19].mxu1  ;;  %v646_v27 = vmax.f32 %v526_v20, 0.0 }
 0x1bb   :  { %v521_v26 = vadd.f32 %v1443_v4, %v520_v25  ;;  %v644_v29 = vmax.f32 %v518_v22, 0.0 }
 0x1bc   :  { %v647_v28 = vmax.f32 %v529_v24, 0.0 }
 0x1bd   :  { %v645_v30 = vmax.f32 %v521_v26, 0.0 }
 0x1be   :  { %v677_v32 = vpack.c.bf16 %v647_v28, %v646_v27 }
 0x1bf   :  { %v676_v33 = vpack.c.bf16 %v645_v30, %v644_v29  ;;  %v1133_v34 = vpop.f32.mrb[20].mxu1 }
 0x1c0   :  { %v542_v35 = vadd.f32 %v1133_v34, %v1443_v4  ;;  %v533_v36 = vpop.f32.mrb[21].mxu1 }
 0x1c1   :  { %v534_v37 = vadd.f32 %v1443_v4, %v533_v36  ;;  %v1134_v38 = vpop.f32.mrb[22].mxu1  ;;  %1175 = vmatprep.mubr.bf16.mxu0 %v676_v33 }
 0x1c2   :  { %v545_v39 = vadd.f32 %v1134_v38, %v1443_v4  ;;  %v536_v40 = vpop.f32.mrb[23].mxu1  ;;  %1176 = vmatmul.mubr.bf16.vlgmr.msra.gmra.mrb[16].mxu0 %v677_v32  ;;  %v650_v42 = vmax.f32 %v542_v35, 0.0 }
 0x1c3   :  { %v537_v41 = vadd.f32 %v1443_v4, %v536_v40  ;;  %v648_v44 = vmax.f32 %v534_v37, 0.0 }
 0x1c4   :  { %v651_v43 = vmax.f32 %v545_v39, 0.0 }
 0x1c5   :  { %v649_v45 = vmax.f32 %v537_v41, 0.0 }
 0x1c6   :  { %v679_v46 = vpack.c.bf16 %v651_v43, %v650_v42 }
 0x1c7   :  { %v678_v47 = vpack.c.bf16 %v649_v45, %v648_v44  ;;  %v1137_v48 = vpop.f32.mrb[24].mxu1 }
 0x1c8   :  { %v558_v49 = vadd.f32 %v1137_v48, %v1443_v4  ;;  %v549_v50 = vpop.f32.mrb[25].mxu1 }
 0x1c9   :  { %v550_v51 = vadd.f32 %v1443_v4, %v549_v50  ;;  %v1138_v52 = vpop.f32.mrb[26].mxu1  ;;  %1179 = vmatprep.mubr.bf16.mxu0 %v678_v47 }
 0x1ca   :  { %v561_v53 = vadd.f32 %v1138_v52, %v1443_v4  ;;  %v552_v54 = vpop.f32.mrb[27].mxu1  ;;  %1180 = vmatmul.mubr.bf16.gmra.mrb[20].mxu0 %v679_v46  ;;  %v654_v56 = vmax.f32 %v558_v49, 0.0 }
 0x1cb   :  { %v553_v55 = vadd.f32 %v1443_v4, %v552_v54  ;;  %v652_v58 = vmax.f32 %v550_v51, 0.0 }
 0x1cc   :  { %v655_v57 = vmax.f32 %v561_v53, 0.0 }
 0x1cd   :  { %v653_v59 = vmax.f32 %v553_v55, 0.0 }
 0x1ce   :  { %v681_v60 = vpack.c.bf16 %v655_v57, %v654_v56 }
 0x1cf   :  { %v680_v61 = vpack.c.bf16 %v653_v59, %v652_v58  ;;  %v1141_v62 = vpop.f32.mrb[28].mxu1 }
 0x1d0   :  { %v574_v63 = vadd.f32 %v1141_v62, %v1443_v4  ;;  %v565_v0 = vpop.f32.mrb[29].mxu1 }
 0x1d1   :  { %v566_v1 = vadd.f32 %v1443_v4, %v565_v0  ;;  %v1142_v2 = vpop.f32.mrb[30].mxu1  ;;  %1183 = vmatprep.mubr.bf16.mxu0 %v680_v61 }
 0x1d2   :  { %v577_v3 = vadd.f32 %v1142_v2, %v1443_v4  ;;  %v568_v5 = vpop.f32.mrb[31].mxu1  ;;  %1184 = vmatmul.mubr.bf16.gmra.mrb[24].mxu0 %v681_v60  ;;  %v658_v8 = vmax.f32 %v574_v63, 0.0 }
 0x1d3   :  { %v569_v6 = vadd.f32 %v1443_v4, %v568_v5  ;;  %v656_v10 = vmax.f32 %v566_v1, 0.0 }
 0x1d4   :  { %v659_v9 = vmax.f32 %v577_v3, 0.0 }
 0x1d5   :  { %v657_v11 = vmax.f32 %v569_v6, 0.0  ;;  %v1480_v6 = vld [vmem:[%s1616_s6] ss:$0 sm:$0xff] }
 0x1d6   :  { %v683_v12 = vpack.c.bf16 %v659_v9, %v658_v8 }
 0x1d7   :  { %v682_v13 = vpack.c.bf16 %v657_v11, %v656_v10  ;;  %v1145_v14 = vpop.f32.mrb[32].mxu1 }
 0x1d8   :  { %v590_v15 = vadd.f32 %v1145_v14, %v1443_v4  ;;  %v581_v16 = vpop.f32.mrb[33].mxu1 }
 0x1d9   :  { %v582_v17 = vadd.f32 %v1443_v4, %v581_v16  ;;  %v1146_v18 = vpop.f32.mrb[34].mxu1  ;;  %1187 = vmatprep.mubr.bf16.mxu0 %v682_v13 }
 0x1da   :  { %v593_v19 = vadd.f32 %v1146_v18, %v1443_v4  ;;  %v584_v31 = vpop.f32.mrb[35].mxu1  ;;  %1188 = vmatmul.mubr.bf16.gmra.mrb[28].mxu0 %v683_v12  ;;  %v662_v20 = vmax.f32 %v590_v15, 0.0 }
 0x1db   :  { %v585_v7 = vadd.f32 %v1443_v4, %v584_v31  ;;  %v660_v22 = vmax.f32 %v582_v17, 0.0 }
 0x1dc   :  { %v663_v21 = vmax.f32 %v593_v19, 0.0 }
 0x1dd   :  { %v661_v23 = vmax.f32 %v585_v7, 0.0 }
 0x1de   :  { %v685_v24 = vpack.c.bf16 %v663_v21, %v662_v20 }
 0x1df   :  { %v684_v25 = vpack.c.bf16 %v661_v23, %v660_v22  ;;  %v1149_v26 = vpop.f32.mrb[36].mxu1 }
 0x1e0   :  { %v606_v27 = vadd.f32 %v1149_v26, %v1443_v4  ;;  %v597_v28 = vpop.f32.mrb[37].mxu1 }
 0x1e1   :  { %v598_v29 = vadd.f32 %v1443_v4, %v597_v28  ;;  %v1150_v30 = vpop.f32.mrb[38].mxu1  ;;  %1191 = vmatprep.mubr.bf16.mxu0 %v684_v25 }
 0x1e2   :  { %v609_v32 = vadd.f32 %v1150_v30, %v1443_v4  ;;  %v600_v33 = vpop.f32.mrb[39].mxu1  ;;  %1192 = vmatmul.mubr.bf16.gmra.mrb[32].mxu0 %v685_v24  ;;  %v666_v35 = vmax.f32 %v606_v27, 0.0 }
 0x1e3   :  { %v601_v34 = vadd.f32 %v1443_v4, %v600_v33  ;;  %v664_v37 = vmax.f32 %v598_v29, 0.0 }
 0x1e4   :  { %v667_v36 = vmax.f32 %v609_v32, 0.0 }
 0x1e5   :  { %v665_v38 = vmax.f32 %v601_v34, 0.0 }
 0x1e6   :  { %v687_v39 = vpack.c.bf16 %v667_v36, %v666_v35 }
 0x1e7   :  { %v686_v40 = vpack.c.bf16 %v665_v38, %v664_v37  ;;  %v1153_v41 = vpop.f32.mrb[40].mxu1 }
 0x1e8   :  { %v622_v42 = vadd.f32 %v1153_v41, %v1443_v4  ;;  %v613_v43 = vpop.f32.mrb[41].mxu1 }
 0x1e9   :  { %v614_v44 = vadd.f32 %v1443_v4, %v613_v43  ;;  %v1154_v45 = vpop.f32.mrb[42].mxu1  ;;  %1195 = vmatprep.mubr.bf16.mxu0 %v686_v40 }
 0x1ea   :  { %v625_v46 = vadd.f32 %v1154_v45, %v1443_v4  ;;  %v616_v47 = vpop.f32.mrb[43].mxu1  ;;  %1196 = vmatmul.mubr.bf16.gmra.mrb[36].mxu0 %v687_v39  ;;  %v670_v49 = vmax.f32 %v622_v42, 0.0 }
 0x1eb   :  { %v617_v48 = vadd.f32 %v1443_v4, %v616_v47  ;;  %v668_v51 = vmax.f32 %v614_v44, 0.0 }
 0x1ec   :  { %v671_v50 = vmax.f32 %v625_v46, 0.0 }
 0x1ed   :  { %v669_v52 = vmax.f32 %v617_v48, 0.0 }
 0x1ee   :  { %v689_v53 = vpack.c.bf16 %v671_v50, %v670_v49 }
 0x1ef   :  { %v688_v54 = vpack.c.bf16 %v669_v52, %v668_v51  ;;  %v1157_v55 = vpop.f32.mrb[44].mxu1 }
 0x1f0   :  { %v638_v56 = vadd.f32 %v1157_v55, %v1443_v4  ;;  %v629_v57 = vpop.f32.mrb[45].mxu1 }
 0x1f1   :  { %v630_v58 = vadd.f32 %v1443_v4, %v629_v57  ;;  %v1158_v59 = vpop.f32.mrb[46].mxu1  ;;  %1199 = vmatprep.mubr.bf16.mxu0 %v688_v54 }
 0x1f2   :  { %v641_v60 = vadd.f32 %v1158_v59, %v1443_v4  ;;  %v632_v61 = vpop.f32.mrb[47].mxu1  ;;  %1200 = vmatmul.mubr.bf16.gmra.mrb[40].mxu0 %v689_v53  ;;  %v674_v63 = vmax.f32 %v638_v56, 0.0 }
 0x1f3   :  { %v633_v62 = vadd.f32 %v1443_v4, %v632_v61  ;;  %v672_v1 = vmax.f32 %v630_v58, 0.0 }
 0x1f4   :  { %v675_v0 = vmax.f32 %v641_v60, 0.0 }
 0x1f5   :  { %v673_v2 = vmax.f32 %v633_v62, 0.0 }
 0x1f6   :  { %v691_v3 = vpack.c.bf16 %v675_v0, %v674_v63 }
 0x1f7   :  { %v690_v5 = vpack.c.bf16 %v673_v2, %v672_v1 }
 0x1f9   :  { %1203 = vmatprep.mubr.bf16.mxu0 %v690_v5 }
 0x1fa   :  { %1204 = vmatmul.mubr.bf16.gmra.mrb[44].mxu0 %v691_v3 }
 0x295   :  { %v1177_v8 = vpop.f32.mrb[16].mxu0 }
 0x296   :  { %v806_v9 = vadd.f32 %v1177_v8, %v1480_v6  ;;  %v797_v10 = vpop.f32.mrb[17].mxu0 }
 0x297   :  { %v798_v11 = vadd.f32 %v1480_v6, %v797_v10  ;;  %v1178_v4 = vpop.f32.mrb[18].mxu0 }
 0x298   :  { %926 = vst [vmem:[%s1617_s7 + $0x10] sm:$0xff] %v806_v9  ;;  %v809_v12 = vadd.f32 %v1178_v4, %v1480_v6  ;;  %v800_v13 = vpop.f32.mrb[19].mxu0 }
 0x299   :  { %924 = vst [vmem:[%s1617_s7] sm:$0xff] %v798_v11  ;;  %v801_v14 = vadd.f32 %v1480_v6, %v800_v13 }
 0x29a   :  { %927 = vst [vmem:[%s1617_s7 + $0x18] sm:$0xff] %v809_v12 }
 0x29b   :  { %925 = vst [vmem:[%s1617_s7 + $0x8] sm:$0xff] %v801_v14 }
 0x29d   :  { %v1181_v15 = vpop.f32.mrb[20].mxu0 }
 0x29e   :  { %v822_v16 = vadd.f32 %v1181_v15, %v1480_v6  ;;  %v813_v17 = vpop.f32.mrb[21].mxu0 }
 0x29f   :  { %v814_v18 = vadd.f32 %v1480_v6, %v813_v17  ;;  %v1182_v19 = vpop.f32.mrb[22].mxu0 }
 0x2a0   :  { %930 = vst [vmem:[%s1617_s7 + $0x30] sm:$0xff] %v822_v16  ;;  %v825_v31 = vadd.f32 %v1182_v19, %v1480_v6  ;;  %v816_v7 = vpop.f32.mrb[23].mxu0 }
 0x2a1   :  { %928 = vst [vmem:[%s1617_s7 + $0x20] sm:$0xff] %v814_v18  ;;  %v817_v20 = vadd.f32 %v1480_v6, %v816_v7 }
 0x2a2   :  { %931 = vst [vmem:[%s1617_s7 + $0x38] sm:$0xff] %v825_v31 }
 0x2a3   :  { %929 = vst [vmem:[%s1617_s7 + $0x28] sm:$0xff] %v817_v20 }
 0x2a5   :  { %v1185_v21 = vpop.f32.mrb[24].mxu0 }
 0x2a6   :  { %v838_v22 = vadd.f32 %v1185_v21, %v1480_v6  ;;  %v829_v23 = vpop.f32.mrb[25].mxu0 }
 0x2a7   :  { %v830_v24 = vadd.f32 %v1480_v6, %v829_v23  ;;  %v1186_v25 = vpop.f32.mrb[26].mxu0 }
 0x2a8   :  { %934 = vst [vmem:[%s1617_s7 + $0x50] sm:$0xff] %v838_v22  ;;  %v841_v26 = vadd.f32 %v1186_v25, %v1480_v6  ;;  %v832_v27 = vpop.f32.mrb[27].mxu0 }
 0x2a9   :  { %932 = vst [vmem:[%s1617_s7 + $0x40] sm:$0xff] %v830_v24  ;;  %v833_v28 = vadd.f32 %v1480_v6, %v832_v27 }
 0x2aa   :  { %935 = vst [vmem:[%s1617_s7 + $0x58] sm:$0xff] %v841_v26 }
 0x2ab   :  { %933 = vst [vmem:[%s1617_s7 + $0x48] sm:$0xff] %v833_v28 }
 0x2ad   :  { %v1189_v29 = vpop.f32.mrb[28].mxu0 }
 0x2ae   :  { %v854_v30 = vadd.f32 %v1189_v29, %v1480_v6  ;;  %v845_v32 = vpop.f32.mrb[29].mxu0 }
 0x2af   :  { %v846_v33 = vadd.f32 %v1480_v6, %v845_v32  ;;  %v1190_v34 = vpop.f32.mrb[30].mxu0 }
 0x2b0   :  { %938 = vst [vmem:[%s1617_s7 + $0x70] sm:$0xff] %v854_v30  ;;  %v857_v35 = vadd.f32 %v1190_v34, %v1480_v6  ;;  %v848_v36 = vpop.f32.mrb[31].mxu0 }
 0x2b1   :  { %936 = vst [vmem:[%s1617_s7 + $0x60] sm:$0xff] %v846_v33  ;;  %v849_v37 = vadd.f32 %v1480_v6, %v848_v36 }
 0x2b2   :  { %939 = vst [vmem:[%s1617_s7 + $0x78] sm:$0xff] %v857_v35 }
 0x2b3   :  { %937 = vst [vmem:[%s1617_s7 + $0x68] sm:$0xff] %v849_v37 }
 0x2b5   :  { %v1193_v38 = vpop.f32.mrb[32].mxu0 }
 0x2b6   :  { %v870_v39 = vadd.f32 %v1193_v38, %v1480_v6  ;;  %v861_v40 = vpop.f32.mrb[33].mxu0 }
 0x2b7   :  { %v862_v41 = vadd.f32 %v1480_v6, %v861_v40  ;;  %v1194_v42 = vpop.f32.mrb[34].mxu0 }
 0x2b8   :  { %942 = vst [vmem:[%s1617_s7 + $0x90] sm:$0xff] %v870_v39  ;;  %v873_v43 = vadd.f32 %v1194_v42, %v1480_v6  ;;  %v864_v44 = vpop.f32.mrb[35].mxu0 }
 0x2b9   :  { %940 = vst [vmem:[%s1617_s7 + $0x80] sm:$0xff] %v862_v41  ;;  %v865_v45 = vadd.f32 %v1480_v6, %v864_v44 }
 0x2ba   :  { %943 = vst [vmem:[%s1617_s7 + $0x98] sm:$0xff] %v873_v43 }
 0x2bb   :  { %941 = vst [vmem:[%s1617_s7 + $0x88] sm:$0xff] %v865_v45 }
 0x2bd   :  { %v1197_v46 = vpop.f32.mrb[36].mxu0 }
 0x2be   :  { %v886_v47 = vadd.f32 %v1197_v46, %v1480_v6  ;;  %v877_v48 = vpop.f32.mrb[37].mxu0 }
 0x2bf   :  { %v878_v49 = vadd.f32 %v1480_v6, %v877_v48  ;;  %v1198_v50 = vpop.f32.mrb[38].mxu0 }
 0x2c0   :  { %946 = vst [vmem:[%s1617_s7 + $0xb0] sm:$0xff] %v886_v47  ;;  %v889_v51 = vadd.f32 %v1198_v50, %v1480_v6  ;;  %v880_v52 = vpop.f32.mrb[39].mxu0 }
 0x2c1   :  { %944 = vst [vmem:[%s1617_s7 + $0xa0] sm:$0xff] %v878_v49  ;;  %v881_v53 = vadd.f32 %v1480_v6, %v880_v52 }
 0x2c2   :  { %947 = vst [vmem:[%s1617_s7 + $0xb8] sm:$0xff] %v889_v51 }
 0x2c3   :  { %945 = vst [vmem:[%s1617_s7 + $0xa8] sm:$0xff] %v881_v53 }
 0x2c5   :  { %v1201_v54 = vpop.f32.mrb[40].mxu0 }
 0x2c6   :  { %v902_v55 = vadd.f32 %v1201_v54, %v1480_v6  ;;  %v893_v56 = vpop.f32.mrb[41].mxu0 }
 0x2c7   :  { %v894_v57 = vadd.f32 %v1480_v6, %v893_v56  ;;  %v1202_v58 = vpop.f32.mrb[42].mxu0 }
 0x2c8   :  { %950 = vst [vmem:[%s1617_s7 + $0xd0] sm:$0xff] %v902_v55  ;;  %v905_v59 = vadd.f32 %v1202_v58, %v1480_v6  ;;  %v896_v60 = vpop.f32.mrb[43].mxu0 }
 0x2c9   :  { %948 = vst [vmem:[%s1617_s7 + $0xc0] sm:$0xff] %v894_v57  ;;  %v897_v61 = vadd.f32 %v1480_v6, %v896_v60 }
 0x2ca   :  { %951 = vst [vmem:[%s1617_s7 + $0xd8] sm:$0xff] %v905_v59 }
 0x2cb   :  { %949 = vst [vmem:[%s1617_s7 + $0xc8] sm:$0xff] %v897_v61 }
 0x2cd   :  { %v1205_v62 = vpop.f32.mrb[44].mxu0 }
 0x2ce   :  { %v918_v63 = vadd.f32 %v1205_v62, %v1480_v6  ;;  %v909_v0 = vpop.f32.mrb[45].mxu0 }
 0x2cf   :  { %v910_v1 = vadd.f32 %v1480_v6, %v909_v0  ;;  %v1206_v2 = vpop.f32.mrb[46].mxu0 }
 0x2d0   :  { %954 = vst [vmem:[%s1617_s7 + $0xf0] sm:$0xff] %v918_v63  ;;  %v921_v3 = vadd.f32 %v1206_v2, %v1480_v6  ;;  %v912_v5 = vpop.f32.mrb[47].mxu0 }
 0x2d1   :  { %952 = vst [vmem:[%s1617_s7 + $0xe0] sm:$0xff] %v910_v1  ;;  %v913_v8 = vadd.f32 %v1480_v6, %v912_v5 }
 0x2d2   :  { %955 = vst [vmem:[%s1617_s7 + $0xf8] sm:$0xff] %v921_v3 }
 0x2d3   :  { %953 = vst [vmem:[%s1617_s7 + $0xe8] sm:$0xff] %v913_v8 }

</bundles_post_ra>
